<compile_context>
chip_gen: v7x
topology: tpu7x:2x2x1
jax: 0.10.0
libtpu: 0.0.40
codegen_flags: <defaults>
</compile_context>

<pallas_src>
import jax
import jax.numpy as jnp
from jax.experimental import pallas as pl
from jax.experimental.pallas import tpu as pltpu


def ts_kernel(x_ref, w_ref, b_ref, inv_t_ref, o_ref):
    # Base-model hot path: linear head on the MXU, f32 accumulation.
    logits = jnp.dot(x_ref[...], w_ref[...], preferred_element_type=jnp.float32)
    # Temperature scaling: multiply by the precomputed per-task reciprocal.
    o_ref[...] = ((logits + b_ref[...]) * inv_t_ref[...]).astype(o_ref.dtype)


def prepare_ts_params(w, b, temperature, *, compute_dtype=jnp.bfloat16):
    """One-time parameter prep (hoisted out of the forward path).

    Pads the task axis to a lane-dense multiple of 128, casts W to the matmul
    stream dtype, and precomputes 1/temperature.
    """
    hidden, n_task = w.shape
    n_pad = 128 * pl.cdiv(n_task, 128)
    pad = n_pad - n_task
    w_p = jnp.pad(w, ((0, 0), (0, pad))).astype(compute_dtype)
    b_p = jnp.pad(b.reshape(1, n_task).astype(jnp.float32), ((0, 0), (0, pad)))
    # Padded temperature lanes are 1.0 (finite); they are sliced off at the end.
    inv_t_p = jnp.pad(
        (1.0 / temperature.astype(jnp.float32)).reshape(1, n_task),
        ((0, 0), (0, pad)),
        constant_values=1.0,
    )
    return {"w": w_p, "b": b_p, "inv_t": inv_t_p, "n_task": int(n_task)}


def _vmem_budget_bytes():
    try:
        cap = int(pltpu.get_tpu_info().vmem_capacity_bytes)
    except Exception:
        cap = 64 * 1024 * 1024  # conservative fallback (v7x physical VMEM)
    return (3 * cap) // 4       # headroom for compiler-internal scratch


def _pick_batch_tile(batch, hidden, n_pad, x_bytes, out_bytes, resident_bytes, budget):
    """Choose the batch tile from the actual VMEM footprint."""
    # Double-buffered (pipelined) per-row cost: x tile in + output tile back.
    per_row = 2 * (hidden * x_bytes + n_pad * out_bytes)
    avail = budget - 2 * resident_bytes  # worst case: resident operands 2-buffered
    tb = max(16, min(512, avail // per_row))
    tb = max(16, (tb // 16) * 16)        # bf16 sublane packing alignment
    if tb >= batch:
        tb = batch                       # full-extent block is always a legal shape
        if batch >= 32:
            # Split so v7x's two TensorCores both get a tile (harmless on 1-TC chips).
            tb = 16 * pl.cdiv(pl.cdiv(batch, 2), 16)
    grid_b = int(pl.cdiv(batch, tb))
    return int(tb), grid_b, per_row


def ts_forward(x, params, *, out_dtype=jnp.bfloat16):
    """TSModel.forward: scaled_logits = model(x) / temperature.

    x:      [batch, hidden]  input features
    params: output of prepare_ts_params (padded W [hidden, n_pad] bf16,
            bias [1, n_pad] f32, 1/temperature [1, n_pad] f32, n_task)
    """
    w_p, b_p, inv_t_p = params["w"], params["b"], params["inv_t"]
    n_task = params["n_task"]
    batch, hidden = x.shape
    assert w_p.shape[0] == hidden
    n_pad = w_p.shape[1]

    # Stream x in the matmul dtype (bf16): halves the dominant HBM stream.
    # (Ideally the upstream feature producer already emits bf16 and this is a no-op.)
    x_c = x if x.dtype == w_p.dtype else x.astype(w_p.dtype)

    x_bytes = jnp.dtype(x_c.dtype).itemsize
    out_bytes = jnp.dtype(out_dtype).itemsize
    resident = (hidden * n_pad * jnp.dtype(w_p.dtype).itemsize  # W
                + 2 * n_pad * 4)                                # bias + inv_t (f32)
    budget = _vmem_budget_bytes()
    tb, grid_b, per_row = _pick_batch_tile(
        batch, hidden, n_pad, x_bytes, out_bytes, resident, budget)
    footprint = 2 * resident + tb * per_row
    vmem_limit = int(min(budget, max(2 * footprint, 32 * 1024 * 1024)))

    def run(single_buffer_resident):
        res_kwargs = (
            dict(pipeline_mode=pl.Buffered(1)) if single_buffer_resident else {}
        )
        fn = pl.pallas_call(
            ts_kernel,
            out_shape=jax.ShapeDtypeStruct((batch, n_pad), out_dtype),
            grid=(grid_b,),
            in_specs=[
                # x: tiled over batch, double-buffered by the Pallas pipeline.
                pl.BlockSpec((tb, hidden), lambda i: (i, 0)),
                # W / bias / 1/temperature: resident across all grid steps.
                pl.BlockSpec((hidden, n_pad), lambda i: (0, 0), **res_kwargs),
                pl.BlockSpec((1, n_pad), lambda i: (0, 0), **res_kwargs),
                pl.BlockSpec((1, n_pad), lambda i: (0, 0), **res_kwargs),
            ],
            out_specs=pl.BlockSpec((tb, n_pad), lambda i: (i, 0)),
            compiler_params=pltpu.CompilerParams(
                # Batch axis is independent -> shardable across v7x's 2 TCs.
                dimension_semantics=("parallel",),
                vmem_limit_bytes=vmem_limit,
            ),
        )
        out = fn(x_c, w_p, b_p, inv_t_p)
        jax.block_until_ready(out)
        return out

    try:
        out = run(single_buffer_resident=True)
    except Exception:
        # pipeline_mode=pl.Buffered(1) unsupported on this jax build; the default
        # double-buffered resident weights are still correct (just use more VMEM).
        out = run(single_buffer_resident=False)

    # Slice away the lane padding of the task axis (batch axis is NOT padded).
    return out[:, :n_task]


if __name__ == "__main__":
    # 40 rows -> one full (32-row) tile + one ragged (8-row) tile, exercising the
    # no-padding ragged path and the 2-step "parallel" grid.
    batch, hidden, n_task = 40, 32, 4

    key = jax.random.PRNGKey(0)
    k_x, k_w, k_b = jax.random.split(key, 3)

    # Input batch.
    x = jax.random.normal(k_x, (batch, hidden), dtype=jnp.float32)

    # Synthetic (deterministic) base-model parameters.
    w = jax.random.normal(k_w, (hidden, n_task), dtype=jnp.float32) * 0.1
    b = jax.random.normal(k_b, (n_task,), dtype=jnp.float32) * 0.1

    # TSModel.__init__ starts temperature at ones (it is then learned); use a
    # non-uniform positive temperature so the scaling path is actually tested.
    temperature = 1.0 + 0.25 * jnp.arange(n_task, dtype=jnp.float32)

    params = prepare_ts_params(w, b, temperature)   # hoisted one-time prep
    out = ts_forward(x, params)
    jax.block_until_ready(out)

    # Pure-JAX reference with the same bf16-stream / f32-accumulate semantics.
    ref = (jnp.dot(x.astype(jnp.bfloat16), w.astype(jnp.bfloat16),
                   preferred_element_type=jnp.float32) + b) / temperature

    assert out.shape == (batch, n_task)
    assert jnp.allclose(out.astype(jnp.float32), ref, atol=1e-2, rtol=1e-2)

    print("KERNEL_OK")
</pallas_src>

<mosaic_0001>
module attributes {stable_mosaic.version = 11 : i64} {
  func.func @ts_kernel(%arg0: i32, %arg1: memref<32x32xbf16, #tpu.memory_space<vmem>>, %arg2: memref<32x128xbf16, #tpu.memory_space<vmem>>, %arg3: memref<1x128xf32, #tpu.memory_space<vmem>>, %arg4: memref<1x128xf32, #tpu.memory_space<vmem>>, %arg5: memref<32x128xbf16, #tpu.memory_space<vmem>>) attributes {dimension_semantics = [#tpu.dimension_semantics<parallel>], iteration_bounds = array<i64: 2>, scalar_prefetch = 0 : i64, scratch_operands = 0 : i64, tpu.core_type = #tpu.core_type<tc>, window_params = [{transform_indices = @transform_0, window_bounds = array<i64: 32, 32>}, {pipeline_mode = #tpu.pipeline_mode<synchronous>, transform_indices = @transform_1, window_bounds = array<i64: 32, 128>}, {pipeline_mode = #tpu.pipeline_mode<synchronous>, transform_indices = @transform_2, window_bounds = array<i64: 1, 128>}, {pipeline_mode = #tpu.pipeline_mode<synchronous>, transform_indices = @transform_3, window_bounds = array<i64: 1, 128>}, {transform_indices = @transform_4, window_bounds = array<i64: 32, 128>}]} {
    %c0 = arith.constant 0 : index
    %c0_0 = arith.constant 0 : index
    %0 = vector.load %arg1[%c0, %c0_0] : memref<32x32xbf16, #tpu.memory_space<vmem>>, vector<32x32xbf16>
    %c0_1 = arith.constant 0 : index
    %c0_2 = arith.constant 0 : index
    %1 = vector.load %arg2[%c0_1, %c0_2] : memref<32x128xbf16, #tpu.memory_space<vmem>>, vector<32x128xbf16>
    %cst = arith.constant dense<0.000000e+00> : vector<32x128xf32>
    %2 = tpu.matmul %0, %1, %cst {dimension_numbers = #tpu.dot_dimension_numbers<[1], [0], [0], [1], [0, 0, 1, 1], [], []>} : vector<32x32xbf16>, vector<32x128xbf16>, vector<32x128xf32> -> vector<32x128xf32>
    %c0_3 = arith.constant 0 : index
    %c0_4 = arith.constant 0 : index
    %3 = vector.load %arg3[%c0_3, %c0_4] : memref<1x128xf32, #tpu.memory_space<vmem>>, vector<1x128xf32>
    %4 = vector.broadcast %3 : vector<1x128xf32> to vector<32x128xf32>
    %5 = arith.addf %2, %4 : vector<32x128xf32>
    %c0_5 = arith.constant 0 : index
    %c0_6 = arith.constant 0 : index
    %6 = vector.load %arg4[%c0_5, %c0_6] : memref<1x128xf32, #tpu.memory_space<vmem>>, vector<1x128xf32>
    %7 = vector.broadcast %6 : vector<1x128xf32> to vector<32x128xf32>
    %8 = arith.mulf %5, %7 : vector<32x128xf32>
    %9 = arith.truncf %8 : vector<32x128xf32> to vector<32x128xbf16>
    %c0_7 = arith.constant 0 : index
    %c0_8 = arith.constant 0 : index
    %10 = vector.load %arg5[%c0_7, %c0_8] : memref<32x128xbf16, #tpu.memory_space<vmem>>, vector<32x128xbf16>
    tpu.vector_store %arg5[%c0_7, %c0_8], %9 {strides = array<i32>} : memref<32x128xbf16, #tpu.memory_space<vmem>>, vector<32x128xbf16>,
    return
  }
  func.func @transform_0(%arg0: i32) -> (i32, i32) {
    %c0_i32 = arith.constant 0 : i32
    %c0_i32_0 = arith.constant 0 : i32
    return %arg0, %c0_i32 : i32, i32
  }
  func.func @transform_1(%arg0: i32) -> (i32, i32) {
    %c0_i32 = arith.constant 0 : i32
    %c0_i32_0 = arith.constant 0 : i32
    %c0_i32_1 = arith.constant 0 : i32
    return %c0_i32, %c0_i32_0 : i32, i32
  }
  func.func @transform_2(%arg0: i32) -> (i32, i32) {
    %c0_i32 = arith.constant 0 : i32
    %c0_i32_0 = arith.constant 0 : i32
    %c0_i32_1 = arith.constant 0 : i32
    return %c0_i32, %c0_i32_0 : i32, i32
  }
  func.func @transform_3(%arg0: i32) -> (i32, i32) {
    %c0_i32 = arith.constant 0 : i32
    %c0_i32_0 = arith.constant 0 : i32
    %c0_i32_1 = arith.constant 0 : i32
    return %c0_i32, %c0_i32_0 : i32, i32
  }
  func.func @transform_4(%arg0: i32) -> (i32, i32) {
    %c0_i32 = arith.constant 0 : i32
    %c0_i32_0 = arith.constant 0 : i32
    return %arg0, %c0_i32 : i32, i32
  }
}

module attributes {stable_mosaic.version = 11 : i64} {
  func.func @ts_kernel(%arg0: i32, %arg1: memref<32x32xbf16, #tpu.memory_space<vmem>>, %arg2: memref<32x128xbf16, #tpu.memory_space<vmem>>, %arg3: memref<1x128xf32, #tpu.memory_space<vmem>>, %arg4: memref<1x128xf32, #tpu.memory_space<vmem>>, %arg5: memref<32x128xbf16, #tpu.memory_space<vmem>>) attributes {dimension_semantics = [#tpu.dimension_semantics<parallel>], iteration_bounds = array<i64: 2>, scalar_prefetch = 0 : i64, scratch_operands = 0 : i64, tpu.core_type = #tpu.core_type<tc>, window_params = [{transform_indices = @transform_0, window_bounds = array<i64: 32, 32>}, {pipeline_mode = #tpu.pipeline_mode<synchronous>, transform_indices = @transform_1, window_bounds = array<i64: 32, 128>}, {pipeline_mode = #tpu.pipeline_mode<synchronous>, transform_indices = @transform_2, window_bounds = array<i64: 1, 128>}, {pipeline_mode = #tpu.pipeline_mode<synchronous>, transform_indices = @transform_3, window_bounds = array<i64: 1, 128>}, {transform_indices = @transform_4, window_bounds = array<i64: 32, 128>}]} {
    %c0 = arith.constant 0 : index
    %c0_0 = arith.constant 0 : index
    %0 = vector.load %arg1[%c0, %c0_0] : memref<32x32xbf16, #tpu.memory_space<vmem>>, vector<32x32xbf16>
    %c0_1 = arith.constant 0 : index
    %c0_2 = arith.constant 0 : index
    %1 = vector.load %arg2[%c0_1, %c0_2] : memref<32x128xbf16, #tpu.memory_space<vmem>>, vector<32x128xbf16>
    %cst = arith.constant dense<0.000000e+00> : vector<32x128xf32>
    %2 = tpu.matmul %0, %1, %cst {dimension_numbers = #tpu.dot_dimension_numbers<[1], [0], [0], [1], [0, 0, 1, 1], [], []>} : vector<32x32xbf16>, vector<32x128xbf16>, vector<32x128xf32> -> vector<32x128xf32>
    %c0_3 = arith.constant 0 : index
    %c0_4 = arith.constant 0 : index
    %3 = vector.load %arg3[%c0_3, %c0_4] : memref<1x128xf32, #tpu.memory_space<vmem>>, vector<1x128xf32>
    %4 = vector.broadcast %3 : vector<1x128xf32> to vector<32x128xf32>
    %5 = arith.addf %2, %4 : vector<32x128xf32>
    %c0_5 = arith.constant 0 : index
    %c0_6 = arith.constant 0 : index
    %6 = vector.load %arg4[%c0_5, %c0_6] : memref<1x128xf32, #tpu.memory_space<vmem>>, vector<1x128xf32>
    %7 = vector.broadcast %6 : vector<1x128xf32> to vector<32x128xf32>
    %8 = arith.mulf %5, %7 : vector<32x128xf32>
    %9 = arith.truncf %8 : vector<32x128xf32> to vector<32x128xbf16>
    %c0_7 = arith.constant 0 : index
    %c0_8 = arith.constant 0 : index
    %10 = vector.load %arg5[%c0_7, %c0_8] : memref<32x128xbf16, #tpu.memory_space<vmem>>, vector<32x128xbf16>
    tpu.vector_store %arg5[%c0_7, %c0_8], %9 {strides = array<i32>} : memref<32x128xbf16, #tpu.memory_space<vmem>>, vector<32x128xbf16>,
    return
  }
  func.func @transform_0(%arg0: i32) -> (i32, i32) {
    %c0_i32 = arith.constant 0 : i32
    %c0_i32_0 = arith.constant 0 : i32
    return %arg0, %c0_i32 : i32, i32
  }
  func.func @transform_1(%arg0: i32) -> (i32, i32) {
    %c0_i32 = arith.constant 0 : i32
    %c0_i32_0 = arith.constant 0 : i32
    %c0_i32_1 = arith.constant 0 : i32
    return %c0_i32, %c0_i32_0 : i32, i32
  }
  func.func @transform_2(%arg0: i32) -> (i32, i32) {
    %c0_i32 = arith.constant 0 : i32
    %c0_i32_0 = arith.constant 0 : i32
    %c0_i32_1 = arith.constant 0 : i32
    return %c0_i32, %c0_i32_0 : i32, i32
  }
  func.func @transform_3(%arg0: i32) -> (i32, i32) {
    %c0_i32 = arith.constant 0 : i32
    %c0_i32_0 = arith.constant 0 : i32
    %c0_i32_1 = arith.constant 0 : i32
    return %c0_i32, %c0_i32_0 : i32, i32
  }
  func.func @transform_4(%arg0: i32) -> (i32, i32) {
    %c0_i32 = arith.constant 0 : i32
    %c0_i32_0 = arith.constant 0 : i32
    return %arg0, %c0_i32 : i32, i32
  }
}

</mosaic_0001>

<bundles_post_ra>
// kernel: tpu_custom_call.1
= control target key start
LH: loop header
LB: loop body
LE: loop exit
PB: predicated region body
PF: predicated region fallthrough
CT: control target
= control target key end

     0   :  { %9 = vsyncpa [#allocation3], 0  ;;  %s751_s0 = inlined_call_operand.vmem [shape: bf16[40,32], index: 0, kind: input, shape index: {}]   ;;  %s752_s1 = inlined_call_operand.vmem [shape: bf16[32,128], index: 1, kind: input, shape index: {}]   ;;  %s753_s2 = inlined_call_operand.vmem [shape: f32[1,128], index: 2, kind: input, shape index: {}]   ;;  %s754_s3 = inlined_call_operand.vmem [shape: f32[1,128], index: 3, kind: input, shape index: {}]   ;;  %s755_s4 = inlined_call_operand.hbm [shape: bf16[40,128], index: 4, kind: output, shape index: {}]  }
   0x1   :  { %11 = vsyncpa [#allocation3 + $0x1], 0  ;;  %s622_s15 = smov 0   ;;  %s624_s16 = smov 0  }
   0x2   :  { %s626_s17 = smov 0   ;;  %s628_s18 = smov 0  }
   0x3 LB: > { %s643_s19 = sadd.s32 4294967295, %s592_s18   ;;  %s430_s20 = sadd.s32 4294967294, %s592_s18   ;;  %s592_s18 = sphi %s628_s18, %s761_s18   ;;  %s588_s17 = sphi %s626_s17, %s760_s17   ;;  %s584_s16 = sphi %s624_s16, %s759_s16   ;;  %s580_s15 = sphi %s622_s15, %s758_s15  }
   0x4   : > { %s647_s21 = sadd.s32 1, %s592_s18   ;;  %s113_s22 = sadd.s32 1, %s588_s17 }
   0x5   : > { %s110_s23 = ssub.s32 %s592_s18, %s647_s21  ;;  %p123_p0 = scmp.ne.s32.totalorder %s588_s17, %s584_s16 }
   0x6   : > { %p111_p1 = scmp.eq.s32.totalorder %s110_s23, 0  ;;  %p124_p2 = scmp.eq.s32.totalorder %s643_s19, 1 }
   0x7   : > { %p129_p3 = scmp.ne.s32.totalorder %s584_s16, %s580_s15  ;;  %p130_p4 = scmp.eq.s32.totalorder %s430_s20, 1 }
   0x8   : > { %s658_s24 = scalar_select %p111_p1, %s588_s17, %s113_s22  }
   0x9   : > { %p660_p5 = por %p124_p2, %p123_p0  ;;  %p664_p6 = por %p130_p4, %p129_p3 }
   0xa   : > { %p433_p7 = scmp.ge.s32.totalorder %s592_s18, 1  ;;  %p174_p8 = scmp.lt.s32.totalorder %s592_s18, 3 }
   0xc   : > { %p175_p9 = pnand %p433_p7, %p174_p8 }
   0xd   : > { %v526_v0 = vld [vmem:[%s752_s1] sm:$0xff] (!%p175_p9)   ;;  %s674_s29 = sshll.u32 (!%p175_p9), %s643_s19, 2  ;;  %v527_v1 = vld [vmem:[%s752_s1 + $0x8] sm:$0xff] (!%p175_p9)   ;;  %vm261_vm0 = vcmask (!%p175_p9), 261120   ;;  %s201_s11 = sand.u32 (!%p175_p9), 1, %s584_s16  }
   0xe   : > { %178 = sbr.rel (%p175_p9) target bundleno = 277 (0x115), region = 36  ;;  %p209_p10 = scmp.lt.s32.totalorder (!%p175_p9), %s674_s29, 4  ;;  %478 = vmatprep.subr.bf16.mxu0 (!%p175_p9), %v526_v0  ;;  %v437_v4 = vld [vmem:[%s753_s2] ss:$0 sm:$0xff] (!%p175_p9) }
   0xf   : > { %479 = vmatpush3.bf16.msra.mxu0 (!%p175_p9), %v526_v0  ;;  %v444_v8 = vld [vmem:[%s754_s3] ss:$0 sm:$0xff] (!%p175_p9)  ;;  %s434_s22 = sshll.u32 (!%p175_p9), %s201_s11, 4  ;;  %s691_s27 = scalar_lea.sflag (!%p175_p9), [#allocation3], %s201_s11 }
  0x10   : > { %480 = vmatprep.subr.bf16.mxu0 (!%p175_p9), %v527_v1  ;;  %s203_s23 = scalar_lea.vmem (!%p175_p9), [#allocation2], %s434_s22 }
  0x13   : > { %481 = vmatpush3.bf16.msra.mxu0 (!%p175_p9), %v527_v1 }
  0x15   : > { %s210_s6 = scalar_select %p209_p10, %s674_s29, 4 }
  0x16   : > { %s357_s28 = ssub.s32 (%p660_p5), 5, %s674_s29 }
  0x17   : > { %s436_s7 = sshll.u32 %s210_s6, 2  ;;  %p358_p11 = scmp.lt.s32.totalorder (%p660_p5), %s357_s28, 4 }
  0x18   : > { %s212_s10 = scalar_lea.vmem %s751_s0, %s436_s7 }
  0x19   : > { %v528_v2 = vld [vmem:[%s212_s10] sm:$0xff]   ;;  %v529_v3 = vld [vmem:[%s212_s10 + $0x8] sm:$0xff]  }
  0x1a   : > { %482 = vmatprep.mubr.msk.bf16.mxu0 %vm261_vm0, %v528_v2 }
  0x1b   : > { %483 = vmatmul.mubr.msk.bf16.vlgmr.msra.gmra.mrb[0].mxu0 %vm261_vm0, %v529_v3 }
  0xee   : > { %v484_v5 = vpop.f32.mrb[0].mxu0 }
  0xef   : > { %v311_v6 = vadd.f32 %v484_v5, %v437_v4  ;;  %v302_v7 = vpop.f32.mrb[1].mxu0 }
  0xf0   : > { %v303_v9 = vadd.f32 %v437_v4, %v302_v7  ;;  %v485_v10 = vpop.f32.mrb[2].mxu0 }
  0xf1   : > { %v314_v11 = vadd.f32 %v485_v10, %v437_v4  ;;  %v305_v12 = vpop.f32.mrb[3].mxu0  ;;  %v326_v14 = vmul.f32 %v444_v8, %v311_v6 }
  0xf2   : > { %v306_v13 = vadd.f32 %v437_v4, %v305_v12  ;;  %v324_v16 = vmul.f32 %v444_v8, %v303_v9  ;;  %355 = sbr.rel (!%p660_p5) target bundleno = 277 (0x115), region = 40 }
  0xf3   : > { %v327_v15 = vmul.f32 %v444_v8, %v314_v11 }
  0xf4   : > { %v325_v17 = vmul.f32 %v444_v8, %v306_v13 }
  0xf5   : > { %v471_v18 = vpack.c.bf16 %v327_v15, %v326_v14 }
  0xf6   : > { %v466_v19 = vpack.c.bf16 %v325_v17, %v324_v16 }
  0xf7   : > { %473 = vst [vmem:[%s203_s23 + $0x8] sm:$0xff] %v471_v18  }
  0xf8   : > { %467 = vst [vmem:[%s203_s23] sm:$0xff] %v466_v19  }
  0xf9   : > { %s763_s28 = smov (!%p358_p11, %s357_s28), 4 }
  0xfa   : > { %s696_s30 = sshll.u32 %s763_s28, 6 }
  0xfb   : > { %s362_s5 = ssub.s32 256, %s696_s30 }
  0xfc   : > { %363 = vsyncadd %s691_s27, %s362_s5  ;;  %p452_p12 = scmp.ne.s32.totalorder %s696_s30, 0  ;;  %s462_s6 = sshll.u32 %s643_s19, 8 }
  0xfd   : > { %s705_s25 = scalar_lea.hbm %s755_s4, %s462_s6  ;;  %s368_s9 = sshll.u32 %s203_s23, 4  ;;  %s707_s9 = int_to_ptr.vmem [resolvable:$true] %s368_s9 }
  0xfe   : > { %s530_s29 = scalar_lea.vmem %s707_s9, %s696_s30  ;;  %s594_s10 = smov [#allocation2]  }
  0xff   : > { %p531_p13 = scmp.ne.s32.totalorder %s707_s9, %s530_s29  ;;  %s534_s11 = sshll.u32 %s594_s10, 4  ;;  %s535_s11 = int_to_ptr.vmem [resolvable:$false] %s534_s11 }
 0x100   : > { %s536_s19 = scalar_lea.vmem %s535_s11, 512  ;;  %p537_p2 = scmp.lt.s32.totalorder %s707_s9, %s535_s11 }
 0x101   : > { %p532_p0 = pnand %p531_p13, %p452_p12  ;;  %p538_p3 = scmp.lt.s32.totalorder %s536_s19, %s530_s29 }
 0x103   : > { %p533_p1 = pneg %p532_p0  ;;  %p539_p4 = por %p538_p3, %p537_p2 }
 0x105   : > { %p540_p5 = pnand %p539_p4, %p533_p1 }
 0x107   : > { %543 = shalt.err (!%p540_p5)
}
 0x108   : > { %s544_s12 = scalar_lea.hbm %s705_s25, %s696_s30  ;;  %s548_s20 = scalar_lea.hbm %s755_s4, 320 }
 0x109   : > { %p545_p7 = scmp.ne.s32.totalorder %s705_s25, %s544_s12  ;;  %p549_p10 = scmp.lt.u32.totalorder %s705_s25, %s755_s4 }
 0x10a   : > { %p550_p11 = scmp.lt.u32.totalorder %s548_s20, %s544_s12  ;;  %p552_p0 = scmp.lt.u32.totalorder %s544_s12, %s705_s25 }
 0x10b   : > { %p546_p8 = pnand %p545_p7, %p452_p12 }
 0x10c   : > { %p551_p13 = por %p550_p11, %p549_p10 }
 0x10d   : > { %p547_p9 = pneg %p546_p8 }
 0x10e   : > { %p553_p1 = por %p552_p0, %p551_p13 }
 0x110   : > { %p554_p2 = pnand %p553_p1, %p547_p9 }
 0x112   : > { %557 = shalt.err (!%p554_p2)
}
 0x113   : > { %s595_s28 = smov 64   ;;  %s596_s5 = smov 4  }
 0x114   : > { %374 = dma.vmem_to_hbm [thread:$0]  (%p452_p12), %s707_s9, %s696_s30, %s705_s25, %s691_s27, %s595_s28, %s595_s28, %s596_s5  }
 0x115 PF: > { %p491_p3 = scmp.ge.s32.totalorder %s592_s18, 2  ;;  %s383_s6 = sand.u32 1, %s580_s15  }
 0x116   : > { %s384_s7 = scalar_lea.sflag [#allocation3], %s383_s6 }
 0x117   : > { %p488_p4 = pnand %p491_p3, %p664_p6 }
 0x119   : > { %575 = dma.done.wait (!%p488_p4), %s384_s7, 256  }
 0x11a   : > { %577 = vsyncadd (!%p488_p4), %s384_s7, 4294967040  ;;  %p14_p5 = scmp.ge.s32.totalorder %s647_s21, 4   ;;  %s758_s15 = smov %s584_s16 }
 0x11b   : > { %s759_s16 = smov %s588_s17  ;;  %s760_s17 = smov %s658_s24 }
 0x11c   : > { %s761_s18 = smov %s647_s21  ;;  %16 = sbr.rel (!%p14_p5) target bundleno = 3 (0x3), region = 71 }
 0x123   :  { %389 = vsyncpa [#allocation3], 1 }
 0x124   :  { %391 = vsyncpa [#allocation3 + $0x1], 1 }

// kernel: tpu_custom_call.1
= control target key start
LH: loop header
LB: loop body
LE: loop exit
PB: predicated region body
PF: predicated region fallthrough
CT: control target
= control target key end

     0   :  { %9 = vsyncpa [#allocation3], 0  ;;  %s751_s0 = inlined_call_operand.vmem [shape: bf16[40,32], index: 0, kind: input, shape index: {}]   ;;  %s752_s1 = inlined_call_operand.vmem [shape: bf16[32,128], index: 1, kind: input, shape index: {}]   ;;  %s753_s2 = inlined_call_operand.vmem [shape: f32[1,128], index: 2, kind: input, shape index: {}]   ;;  %s754_s3 = inlined_call_operand.vmem [shape: f32[1,128], index: 3, kind: input, shape index: {}]   ;;  %s755_s4 = inlined_call_operand.hbm [shape: bf16[40,128], index: 4, kind: output, shape index: {}]  }
   0x1   :  { %11 = vsyncpa [#allocation3 + $0x1], 0  ;;  %s622_s15 = smov 0   ;;  %s624_s16 = smov 0  }
   0x2   :  { %s626_s17 = smov 0   ;;  %s628_s18 = smov 0  }
   0x3 LB: > { %s643_s19 = sadd.s32 4294967295, %s592_s18   ;;  %s430_s20 = sadd.s32 4294967294, %s592_s18   ;;  %s592_s18 = sphi %s628_s18, %s761_s18   ;;  %s588_s17 = sphi %s626_s17, %s760_s17   ;;  %s584_s16 = sphi %s624_s16, %s759_s16   ;;  %s580_s15 = sphi %s622_s15, %s758_s15  }
   0x4   : > { %s647_s21 = sadd.s32 1, %s592_s18   ;;  %s113_s22 = sadd.s32 1, %s588_s17 }
   0x5   : > { %s110_s23 = ssub.s32 %s592_s18, %s647_s21  ;;  %p123_p0 = scmp.ne.s32.totalorder %s588_s17, %s584_s16 }
   0x6   : > { %p111_p1 = scmp.eq.s32.totalorder %s110_s23, 0  ;;  %p124_p2 = scmp.eq.s32.totalorder %s643_s19, 1 }
   0x7   : > { %p129_p3 = scmp.ne.s32.totalorder %s584_s16, %s580_s15  ;;  %p130_p4 = scmp.eq.s32.totalorder %s430_s20, 1 }
   0x8   : > { %s658_s24 = scalar_select %p111_p1, %s588_s17, %s113_s22  }
   0x9   : > { %p660_p5 = por %p124_p2, %p123_p0  ;;  %p664_p6 = por %p130_p4, %p129_p3 }
   0xa   : > { %p433_p7 = scmp.ge.s32.totalorder %s592_s18, 1  ;;  %p174_p8 = scmp.lt.s32.totalorder %s592_s18, 3 }
   0xc   : > { %p175_p9 = pnand %p433_p7, %p174_p8 }
   0xd   : > { %v526_v0 = vld [vmem:[%s752_s1] sm:$0xff] (!%p175_p9)   ;;  %s674_s29 = sshll.u32 (!%p175_p9), %s643_s19, 2  ;;  %v527_v1 = vld [vmem:[%s752_s1 + $0x8] sm:$0xff] (!%p175_p9)   ;;  %vm261_vm0 = vcmask (!%p175_p9), 261120   ;;  %s201_s11 = sand.u32 (!%p175_p9), 1, %s584_s16  }
   0xe   : > { %178 = sbr.rel (%p175_p9) target bundleno = 277 (0x115), region = 36  ;;  %p209_p10 = scmp.lt.s32.totalorder (!%p175_p9), %s674_s29, 4  ;;  %478 = vmatprep.subr.bf16.mxu0 (!%p175_p9), %v526_v0  ;;  %v437_v4 = vld [vmem:[%s753_s2] ss:$0 sm:$0xff] (!%p175_p9) }
   0xf   : > { %479 = vmatpush3.bf16.msra.mxu0 (!%p175_p9), %v526_v0  ;;  %v444_v8 = vld [vmem:[%s754_s3] ss:$0 sm:$0xff] (!%p175_p9)  ;;  %s434_s22 = sshll.u32 (!%p175_p9), %s201_s11, 4  ;;  %s691_s27 = scalar_lea.sflag (!%p175_p9), [#allocation3], %s201_s11 }
  0x10   : > { %480 = vmatprep.subr.bf16.mxu0 (!%p175_p9), %v527_v1  ;;  %s203_s23 = scalar_lea.vmem (!%p175_p9), [#allocation2], %s434_s22 }
  0x13   : > { %481 = vmatpush3.bf16.msra.mxu0 (!%p175_p9), %v527_v1 }
  0x15   : > { %s210_s6 = scalar_select %p209_p10, %s674_s29, 4 }
  0x16   : > { %s357_s28 = ssub.s32 (%p660_p5), 5, %s674_s29 }
  0x17   : > { %s436_s7 = sshll.u32 %s210_s6, 2  ;;  %p358_p11 = scmp.lt.s32.totalorder (%p660_p5), %s357_s28, 4 }
  0x18   : > { %s212_s10 = scalar_lea.vmem %s751_s0, %s436_s7 }
  0x19   : > { %v528_v2 = vld [vmem:[%s212_s10] sm:$0xff]   ;;  %v529_v3 = vld [vmem:[%s212_s10 + $0x8] sm:$0xff]  }
  0x1a   : > { %482 = vmatprep.mubr.msk.bf16.mxu0 %vm261_vm0, %v528_v2 }
  0x1b   : > { %483 = vmatmul.mubr.msk.bf16.vlgmr.msra.gmra.mrb[0].mxu0 %vm261_vm0, %v529_v3 }
  0xee   : > { %v484_v5 = vpop.f32.mrb[0].mxu0 }
  0xef   : > { %v311_v6 = vadd.f32 %v484_v5, %v437_v4  ;;  %v302_v7 = vpop.f32.mrb[1].mxu0 }
  0xf0   : > { %v303_v9 = vadd.f32 %v437_v4, %v302_v7  ;;  %v485_v10 = vpop.f32.mrb[2].mxu0 }
  0xf1   : > { %v314_v11 = vadd.f32 %v485_v10, %v437_v4  ;;  %v305_v12 = vpop.f32.mrb[3].mxu0  ;;  %v326_v14 = vmul.f32 %v444_v8, %v311_v6 }
  0xf2   : > { %v306_v13 = vadd.f32 %v437_v4, %v305_v12  ;;  %v324_v16 = vmul.f32 %v444_v8, %v303_v9  ;;  %355 = sbr.rel (!%p660_p5) target bundleno = 277 (0x115), region = 40 }
  0xf3   : > { %v327_v15 = vmul.f32 %v444_v8, %v314_v11 }
  0xf4   : > { %v325_v17 = vmul.f32 %v444_v8, %v306_v13 }
  0xf5   : > { %v471_v18 = vpack.c.bf16 %v327_v15, %v326_v14 }
  0xf6   : > { %v466_v19 = vpack.c.bf16 %v325_v17, %v324_v16 }
  0xf7   : > { %473 = vst [vmem:[%s203_s23 + $0x8] sm:$0xff] %v471_v18  }
  0xf8   : > { %467 = vst [vmem:[%s203_s23] sm:$0xff] %v466_v19  }
  0xf9   : > { %s763_s28 = smov (!%p358_p11, %s357_s28), 4 }
  0xfa   : > { %s696_s30 = sshll.u32 %s763_s28, 6 }
  0xfb   : > { %s362_s5 = ssub.s32 256, %s696_s30 }
  0xfc   : > { %363 = vsyncadd %s691_s27, %s362_s5  ;;  %p452_p12 = scmp.ne.s32.totalorder %s696_s30, 0  ;;  %s462_s6 = sshll.u32 %s643_s19, 8 }
  0xfd   : > { %s705_s25 = scalar_lea.hbm %s755_s4, %s462_s6  ;;  %s368_s9 = sshll.u32 %s203_s23, 4  ;;  %s707_s9 = int_to_ptr.vmem [resolvable:$true] %s368_s9 }
  0xfe   : > { %s530_s29 = scalar_lea.vmem %s707_s9, %s696_s30  ;;  %s594_s10 = smov [#allocation2]  }
  0xff   : > { %p531_p13 = scmp.ne.s32.totalorder %s707_s9, %s530_s29  ;;  %s534_s11 = sshll.u32 %s594_s10, 4  ;;  %s535_s11 = int_to_ptr.vmem [resolvable:$false] %s534_s11 }
 0x100   : > { %s536_s19 = scalar_lea.vmem %s535_s11, 512  ;;  %p537_p2 = scmp.lt.s32.totalorder %s707_s9, %s535_s11 }
 0x101   : > { %p532_p0 = pnand %p531_p13, %p452_p12  ;;  %p538_p3 = scmp.lt.s32.totalorder %s536_s19, %s530_s29 }
 0x103   : > { %p533_p1 = pneg %p532_p0  ;;  %p539_p4 = por %p538_p3, %p537_p2 }
 0x105   : > { %p540_p5 = pnand %p539_p4, %p533_p1 }
 0x107   : > { %543 = shalt.err (!%p540_p5)
}
 0x108   : > { %s544_s12 = scalar_lea.hbm %s705_s25, %s696_s30  ;;  %s548_s20 = scalar_lea.hbm %s755_s4, 320 }
 0x109   : > { %p545_p7 = scmp.ne.s32.totalorder %s705_s25, %s544_s12  ;;  %p549_p10 = scmp.lt.u32.totalorder %s705_s25, %s755_s4 }
 0x10a   : > { %p550_p11 = scmp.lt.u32.totalorder %s548_s20, %s544_s12  ;;  %p552_p0 = scmp.lt.u32.totalorder %s544_s12, %s705_s25 }
 0x10b   : > { %p546_p8 = pnand %p545_p7, %p452_p12 }
 0x10c   : > { %p551_p13 = por %p550_p11, %p549_p10 }
 0x10d   : > { %p547_p9 = pneg %p546_p8 }
 0x10e   : > { %p553_p1 = por %p552_p0, %p551_p13 }
 0x110   : > { %p554_p2 = pnand %p553_p1, %p547_p9 }
 0x112   : > { %557 = shalt.err (!%p554_p2)
}
 0x113   : > { %s595_s28 = smov 64   ;;  %s596_s5 = smov 4  }
 0x114   : > { %374 = dma.vmem_to_hbm [thread:$0]  (%p452_p12), %s707_s9, %s696_s30, %s705_s25, %s691_s27, %s595_s28, %s595_s28, %s596_s5  }
 0x115 PF: > { %p491_p3 = scmp.ge.s32.totalorder %s592_s18, 2  ;;  %s383_s6 = sand.u32 1, %s580_s15  }
 0x116   : > { %s384_s7 = scalar_lea.sflag [#allocation3], %s383_s6 }
 0x117   : > { %p488_p4 = pnand %p491_p3, %p664_p6 }
 0x119   : > { %575 = dma.done.wait (!%p488_p4), %s384_s7, 256  }
 0x11a   : > { %577 = vsyncadd (!%p488_p4), %s384_s7, 4294967040  ;;  %p14_p5 = scmp.ge.s32.totalorder %s647_s21, 4   ;;  %s758_s15 = smov %s584_s16 }
 0x11b   : > { %s759_s16 = smov %s588_s17  ;;  %s760_s17 = smov %s658_s24 }
 0x11c   : > { %s761_s18 = smov %s647_s21  ;;  %16 = sbr.rel (!%p14_p5) target bundleno = 3 (0x3), region = 71 }
 0x123   :  { %389 = vsyncpa [#allocation3], 1 }
 0x124   :  { %391 = vsyncpa [#allocation3 + $0x1], 1 }

</bundles_post_ra>
